<compile_context>
chip_gen: v7x
topology: tpu7x:2x2x1
jax: 0.10.0
libtpu: 0.0.40
codegen_flags: <defaults>
</compile_context>

<pallas_src>
import jax
import jax.numpy as jnp
import numpy as np
from jax.experimental import pallas as pl
from jax.experimental.pallas import tpu as pltpu

_EPS = 1e-5
_LANES = 128  # lane width / channel & K padding quantum


def _round_up(x, m):
    return (x + m - 1) // m * m


def _device_budgets():
    """Per-generation (tile rows, scoped VMEM limit).

    v5e/v6e: 128 MiB physical VMEM -> 1024-row tiles, 64 MiB scoped limit.
    v7x (64 MiB physical) or unknown: conservative 512 rows / 32 MiB so the
    worst-case ResNet conv tile (~20 MiB double-buffered) stays safe.
    """
    try:
        cap = getattr(pltpu.get_tpu_info(), "vmem_capacity_bytes", None)
    except Exception:
        cap = None
    if isinstance(cap, int) and cap >= 100 * 1024 * 1024:
        return 1024, 64 * 1024 * 1024
    return 512, 32 * 1024 * 1024


_MAX_TILE_ROWS, _VMEM_LIMIT = _device_budgets()


def _tile_rows(m):
    """Balanced M tiles (multiple of 16 for bf16 sublane packing)."""
    n_tiles = -(-m // _MAX_TILE_ROWS)
    tm = _round_up(-(-m // n_tiles), 16)
    return tm, _round_up(m, tm)


def _pad_rows(a, m_pad):
    return jnp.pad(a, ((0, m_pad - a.shape[0]), (0, 0)))


def _pad_channels(a, c_pad):
    pads = [(0, 0)] * (a.ndim - 1) + [(0, c_pad - a.shape[-1])]
    return jnp.pad(a, pads)


# --------------------------------------------------------------------------
# Pallas kernels
# --------------------------------------------------------------------------
def _matmul_stats_kernel(x_ref, w_ref, o_ref, sum_ref, ssq_ref):
    """(TM, K)bf16 @ (K, C)bf16 -> f32 accumulate, store bf16, and emit
    per-tile BN partial sums / sums-of-squares (no cross-step carry, so the
    grid axis is megacore-parallel)."""
    acc = jnp.dot(x_ref[...], w_ref[...], preferred_element_type=jnp.float32)
    o_ref[...] = acc.astype(o_ref.dtype)
    sum_ref[...] = jnp.sum(acc, axis=0, keepdims=True).reshape(sum_ref.shape)
    ssq_ref[...] = jnp.sum(acc * acc, axis=0, keepdims=True).reshape(ssq_ref.shape)


def _make_bn_apply_kernel(residual_mode, relu):
    """Fused: y = x*scale + shift (+ bn(residual) | + residual) (+ ReLU).
    residual_mode in {None, "raw", "bn"}.  Math in f32, output dtype per spec."""
    def kernel(*refs):
        if residual_mode == "bn":
            x_ref, s_ref, b_ref, r_ref, rs_ref, rb_ref, o_ref = refs
        elif residual_mode == "raw":
            x_ref, s_ref, b_ref, r_ref, o_ref = refs
        else:
            x_ref, s_ref, b_ref, o_ref = refs
        y = x_ref[...].astype(jnp.float32) * s_ref[...] + b_ref[...]
        if residual_mode == "bn":
            y = y + r_ref[...].astype(jnp.float32) * rs_ref[...] + rb_ref[...]
        elif residual_mode == "raw":
            y = y + r_ref[...].astype(jnp.float32)
        if relu:
            y = jnp.maximum(y, 0.0)
        o_ref[...] = y.astype(o_ref.dtype)
    return kernel


# --------------------------------------------------------------------------
# conv (as matmul) + fused BN-stats wrapper
# --------------------------------------------------------------------------
def _conv_stats(patches, w_bf16, m_true, tm, m_pad):
    """patches: (m_true, K); w_bf16: (K, C) bf16.
    Returns (conv_out (m_pad, C) bf16, mean (1, C) f32, var (1, C) f32)."""
    k = patches.shape[1]
    c = w_bf16.shape[-1]
    n_tiles = m_pad // tm
    patches = _pad_rows(patches.astype(jnp.bfloat16), m_pad)

    conv_out, psum, pssq = pl.pallas_call(
        _matmul_stats_kernel,
        grid=(n_tiles,),
        in_specs=[
            pl.BlockSpec((tm, k), lambda i: (i, 0)),        # streamed M tiles
            pl.BlockSpec((k, c), lambda i: (0, 0)),         # weights stay resident
        ],
        out_specs=(
            pl.BlockSpec((tm, c), lambda i: (i, 0)),
            pl.BlockSpec((1, 1, c), lambda i: (i, 0, 0)),   # per-tile partial stats
            pl.BlockSpec((1, 1, c), lambda i: (i, 0, 0)),
        ),
        out_shape=(
            jax.ShapeDtypeStruct((m_pad, c), jnp.bfloat16),
            jax.ShapeDtypeStruct((n_tiles, 1, c), jnp.float32),
            jax.ShapeDtypeStruct((n_tiles, 1, c), jnp.float32),
        ),
        compiler_params=pltpu.CompilerParams(
            dimension_semantics=("parallel",),              # both TCs on v7x
            vmem_limit_bytes=_VMEM_LIMIT),
    )(patches, w_bf16)

    # Tiny O(n_tiles*C) finalization (zero-padded rows/channels contribute zero).
    csum = jnp.sum(psum, axis=0)
    cssq = jnp.sum(pssq, axis=0)
    mean = csum / m_true
    var = jnp.maximum(cssq / m_true - mean * mean, 0.0)
    return conv_out, mean, var


def _bn_scale_shift(mean, var, gamma, beta):
    scale = gamma * jax.lax.rsqrt(var + _EPS)
    return scale, beta - mean * scale


def _bn_apply(x, scale, shift, tm, *, out_dtype, relu,
              residual=None, residual_scale=None, residual_shift=None):
    """Tiled fused BN apply (+ optional residual / residual-BN) (+ ReLU)."""
    m_pad, c = x.shape
    row_spec = pl.BlockSpec((tm, c), lambda i: (i, 0))
    chan_spec = pl.BlockSpec((1, c), lambda i: (0, 0))
    args = [x, scale, shift]
    in_specs = [row_spec, chan_spec, chan_spec]
    if residual is None:
        mode = None
    else:
        args.append(residual)
        in_specs.append(row_spec)
        if residual_scale is None:
            mode = "raw"
        else:
            args += [residual_scale, residual_shift]
            in_specs += [chan_spec, chan_spec]
            mode = "bn"
    return pl.pallas_call(
        _make_bn_apply_kernel(mode, relu),
        grid=(m_pad // tm,),
        in_specs=in_specs,
        out_specs=row_spec,
        out_shape=jax.ShapeDtypeStruct((m_pad, c), out_dtype),
        compiler_params=pltpu.CompilerParams(
            dimension_semantics=("parallel",),
            vmem_limit_bytes=_VMEM_LIMIT),
    )(*args)


# --------------------------------------------------------------------------
# im2col / weight prep glue (single pass, stride-aware; K padded once)
# --------------------------------------------------------------------------
def _im2col_3x3(x_nhwc, stride, k_pad):
    """x: (N, H, W, C) -> patches (N*Ho*Wo, k_pad) for a padding-1 3x3 conv.
    k_pad >= 9*C; the extra columns are zeros (paired with zero weight rows)."""
    n, h, w, c = x_nhwc.shape
    ho = (h - 1) // stride + 1
    wo = (w - 1) // stride + 1
    xp = jnp.pad(x_nhwc, ((0, 0), (1, 1), (1, 1), (0, 0)))
    taps = []
    for dy in range(3):
        for dx in range(3):
            win = jax.lax.slice(
                xp, (0, dy, dx, 0),
                (n, dy + (ho - 1) * stride + 1, dx + (wo - 1) * stride + 1, c),
                (1, stride, stride, 1))
            taps.append(win.reshape(n * ho * wo, c))
    if k_pad > 9 * c:
        taps.append(jnp.zeros((n * ho * wo, k_pad - 9 * c), x_nhwc.dtype))
    return jnp.concatenate(taps, axis=-1), ho, wo


def _prep_w3x3(w_hwio, k_pad, cout_p):
    kh, kw, cin, cout = w_hwio.shape
    wf = w_hwio.reshape(kh * kw * cin, cout)            # reshape BEFORE padding K
    wf = jnp.pad(wf, ((0, k_pad - kh * kw * cin), (0, cout_p - cout)))
    return wf.astype(jnp.bfloat16)


# --------------------------------------------------------------------------
# BasicBlock
# --------------------------------------------------------------------------
def init_basic_block_params(key, in_planes, planes, stride):
    ks = jax.random.split(key, 9)
    p = {
        "w1": 0.2 * jax.random.normal(ks[0], (3, 3, in_planes, planes), jnp.float32),
        "g1": 1.0 + 0.1 * jax.random.normal(ks[1], (planes,), jnp.float32),
        "b1": 0.1 * jax.random.normal(ks[2], (planes,), jnp.float32),
        "w2": 0.2 * jax.random.normal(ks[3], (3, 3, planes, planes), jnp.float32),
        "g2": 1.0 + 0.1 * jax.random.normal(ks[4], (planes,), jnp.float32),
        "b2": 0.1 * jax.random.normal(ks[5], (planes,), jnp.float32),
    }
    if stride != 1 or in_planes != planes:
        p["w_sc"] = 0.2 * jax.random.normal(ks[6], (in_planes, planes), jnp.float32)
        p["g_sc"] = 1.0 + 0.1 * jax.random.normal(ks[7], (planes,), jnp.float32)
        p["b_sc"] = 0.1 * jax.random.normal(ks[8], (planes,), jnp.float32)
    return p


def basic_block_forward(x_nchw, params, stride):
    # One NCHW -> NHWC transpose per block; conv inputs bf16, BN/stats math f32.
    x = jnp.transpose(x_nchw, (0, 2, 3, 1)).astype(jnp.float32)
    x_bf = x.astype(jnp.bfloat16)
    n, h, w, cin = x.shape
    planes = params["w1"].shape[-1]
    cp = _round_up(planes, _LANES)                       # lane-dense output channels

    # ---- conv1 (3x3, stride) + bn1 + relu ---------------------------------
    k1 = _round_up(9 * cin, _LANES)                      # pad K once, not per tap
    p1, ho, wo = _im2col_3x3(x_bf, stride, k1)           # (M, k1) bf16
    m = n * ho * wo
    tm, m_pad = _tile_rows(m)
    w1 = _prep_w3x3(params["w1"], k1, cp)
    g1 = _pad_channels(params["g1"].reshape(1, -1), cp)
    b1 = _pad_channels(params["b1"].reshape(1, -1), cp)
    c1, mean1, var1 = _conv_stats(p1, w1, m, tm, m_pad)
    s1, sh1 = _bn_scale_shift(mean1, var1, g1, b1)
    h1 = _bn_apply(c1, s1, sh1, tm, out_dtype=jnp.bfloat16, relu=True)

    # ---- conv2 (3x3, stride 1) --------------------------------------------
    h1 = h1[:m, :planes].reshape(n, ho, wo, planes)      # drop lane padding pre-im2col
    k2 = _round_up(9 * planes, _LANES)
    p2, _, _ = _im2col_3x3(h1, 1, k2)                    # (M, k2) bf16
    w2 = _prep_w3x3(params["w2"], k2, cp)
    g2 = _pad_channels(params["g2"].reshape(1, -1), cp)
    b2 = _pad_channels(params["b2"].reshape(1, -1), cp)
    c2, mean2, var2 = _conv_stats(p2, w2, m, tm, m_pad)
    s2, sh2 = _bn_scale_shift(mean2, var2, g2, b2)

    # ---- shortcut + fused (bn2 + bn_sc + residual add + relu) --------------
    if "w_sc" in params:
        ksc = _round_up(cin, _LANES)
        xs = _pad_channels(x_bf[:, ::stride, ::stride, :].reshape(m, cin), ksc)
        wsc = jnp.pad(params["w_sc"],
                      ((0, ksc - cin), (0, cp - planes))).astype(jnp.bfloat16)
        gsc = _pad_channels(params["g_sc"].reshape(1, -1), cp)
        bsc = _pad_channels(params["b_sc"].reshape(1, -1), cp)
        c_sc, mean_sc, var_sc = _conv_stats(xs, wsc, m, tm, m_pad)
        s_sc, sh_sc = _bn_scale_shift(mean_sc, var_sc, gsc, bsc)
        out = _bn_apply(c2, s2, sh2, tm, out_dtype=jnp.float32, relu=True,
                        residual=c_sc, residual_scale=s_sc, residual_shift=sh_sc)
    else:
        # identity shortcut (stride == 1 and cin == planes)
        res = _pad_rows(_pad_channels(x.reshape(m, cin), cp), m_pad)
        out = _bn_apply(c2, s2, sh2, tm, out_dtype=jnp.float32, relu=True,
                        residual=res)

    out = out[:m, :planes].reshape(n, ho, wo, planes)
    return jnp.transpose(out, (0, 3, 1, 2))              # NHWC -> NCHW


# --------------------------------------------------------------------------
# Pure-JAX reference (same bf16 matmul inputs / f32 accumulation as the kernel)
# --------------------------------------------------------------------------
def reference_forward(x_nchw, params, stride):
    def conv(x, w_hwio, s, pad):
        return jax.lax.conv_general_dilated(
            x.astype(jnp.bfloat16), w_hwio.astype(jnp.bfloat16),
            (s, s), ((pad, pad), (pad, pad)),
            dimension_numbers=("NCHW", "HWIO", "NCHW"),
            preferred_element_type=jnp.float32)

    def bn(x, g, b):
        m = x.mean(axis=(0, 2, 3), keepdims=True)
        v = ((x - m) ** 2).mean(axis=(0, 2, 3), keepdims=True)
        return (x - m) / jnp.sqrt(v + _EPS) * g.reshape(1, -1, 1, 1) + b.reshape(1, -1, 1, 1)

    out = jax.nn.relu(bn(conv(x_nchw, params["w1"], stride, 1), params["g1"], params["b1"]))
    out = bn(conv(out, params["w2"], 1, 1), params["g2"], params["b2"])
    if "w_sc" in params:
        w = params["w_sc"].reshape(1, 1, *params["w_sc"].shape)
        sc = bn(conv(x_nchw, w, stride, 0), params["g_sc"], params["b_sc"])
    else:
        sc = x_nchw
    return jax.nn.relu(out + sc)


if __name__ == "__main__":
    key = jax.random.PRNGKey(0)
    kx, kp, kx2, kp2 = jax.random.split(key, 4)
    fwd = jax.jit(basic_block_forward, static_argnums=2)

    # Tolerance slightly wider than before because intermediates now live in
    # bf16 in HBM (a perf-review change); all accumulation stays f32.
    ATOL = RTOL = 1.5e-2

    # Downsampling block: exercises stride-2 conv + 1x1 projection shortcut.
    in_planes, planes, stride = 4, 8, 2
    x = jax.random.normal(kx, (2, in_planes, 16, 16), jnp.float32)
    params = init_basic_block_params(kp, in_planes, planes, stride)
    out = jax.block_until_ready(fwd(x, params, stride))
    ref = jax.block_until_ready(reference_forward(x, params, stride))
    assert out.shape == (2, planes, 8, 8), out.shape
    np.testing.assert_allclose(np.asarray(out), np.asarray(ref), atol=ATOL, rtol=RTOL)

    # Identity-shortcut block (stride 1, in_planes == planes).
    x2 = jax.random.normal(kx2, (2, 8, 16, 16), jnp.float32)
    params2 = init_basic_block_params(kp2, 8, 8, 1)
    out2 = jax.block_until_ready(fwd(x2, params2, 1))
    ref2 = jax.block_until_ready(reference_forward(x2, params2, 1))
    assert out2.shape == (2, 8, 16, 16), out2.shape
    np.testing.assert_allclose(np.asarray(out2), np.asarray(ref2), atol=ATOL, rtol=RTOL)

    print("KERNEL_OK")
</pallas_src>

<mosaic_0001>
module attributes {stable_mosaic.version = 11 : i64} {
  func.func @_matmul_stats_kernel(%arg0: i32, %arg1: memref<128x128xbf16, #tpu.memory_space<vmem>>, %arg2: memref<128x128xbf16, #tpu.memory_space<vmem>>, %arg3: memref<128x128xbf16, #tpu.memory_space<vmem>>, %arg4: memref<1x1x128xf32, #tpu.memory_space<vmem>>, %arg5: memref<1x1x128xf32, #tpu.memory_space<vmem>>) attributes {dimension_semantics = [#tpu.dimension_semantics<parallel>], iteration_bounds = array<i64: 1>, scalar_prefetch = 0 : i64, scratch_operands = 0 : i64, tpu.core_type = #tpu.core_type<tc>, window_params = [{transform_indices = @transform_0, window_bounds = array<i64: 128, 128>}, {pipeline_mode = #tpu.pipeline_mode<synchronous>, transform_indices = @transform_1, window_bounds = array<i64: 128, 128>}, {transform_indices = @transform_2, window_bounds = array<i64: 128, 128>}, {transform_indices = @transform_3, window_bounds = array<i64: 1, 1, 128>}, {transform_indices = @transform_4, window_bounds = array<i64: 1, 1, 128>}]} {
    %c0 = arith.constant 0 : index
    %c0_0 = arith.constant 0 : index
    %0 = vector.load %arg1[%c0, %c0_0] : memref<128x128xbf16, #tpu.memory_space<vmem>>, vector<128x128xbf16>
    %c0_1 = arith.constant 0 : index
    %c0_2 = arith.constant 0 : index
    %1 = vector.load %arg2[%c0_1, %c0_2] : memref<128x128xbf16, #tpu.memory_space<vmem>>, vector<128x128xbf16>
    %cst = arith.constant dense<0.000000e+00> : vector<128x128xf32>
    %2 = tpu.matmul %0, %1, %cst {dimension_numbers = #tpu.dot_dimension_numbers<[1], [0], [0], [1], [0, 0, 1, 1], [], []>} : vector<128x128xbf16>, vector<128x128xbf16>, vector<128x128xf32> -> vector<128x128xf32>
    %3 = arith.truncf %2 : vector<128x128xf32> to vector<128x128xbf16>
    %c0_3 = arith.constant 0 : index
    %c0_4 = arith.constant 0 : index
    %4 = vector.load %arg3[%c0_3, %c0_4] : memref<128x128xbf16, #tpu.memory_space<vmem>>, vector<128x128xbf16>
    tpu.vector_store %arg3[%c0_3, %c0_4], %3 {strides = array<i32>} : memref<128x128xbf16, #tpu.memory_space<vmem>>, vector<128x128xbf16>,
    %cst_5 = arith.constant dense<0.000000e+00> : vector<128xf32>
    %5 = vector.multi_reduction <add>, %2, %cst_5 [0] : vector<128x128xf32> to vector<128xf32>
    %6 = vector.shape_cast %5 : vector<128xf32> to vector<1x128xf32>
    %7 = vector.shape_cast %6 : vector<1x128xf32> to vector<1x1x128xf32>
    %c0_6 = arith.constant 0 : index
    %c0_7 = arith.constant 0 : index
    %c0_8 = arith.constant 0 : index
    %8 = vector.load %arg4[%c0_6, %c0_7, %c0_8] : memref<1x1x128xf32, #tpu.memory_space<vmem>>, vector<1x1x128xf32>
    tpu.vector_store %arg4[%c0_6, %c0_7, %c0_8], %7 {strides = array<i32>} : memref<1x1x128xf32, #tpu.memory_space<vmem>>, vector<1x1x128xf32>,
    %9 = arith.mulf %2, %2 : vector<128x128xf32>
    %cst_9 = arith.constant dense<0.000000e+00> : vector<128xf32>
    %10 = vector.multi_reduction <add>, %9, %cst_9 [0] : vector<128x128xf32> to vector<128xf32>
    %11 = vector.shape_cast %10 : vector<128xf32> to vector<1x128xf32>
    %12 = vector.shape_cast %11 : vector<1x128xf32> to vector<1x1x128xf32>
    %c0_10 = arith.constant 0 : index
    %c0_11 = arith.constant 0 : index
    %c0_12 = arith.constant 0 : index
    %13 = vector.load %arg5[%c0_10, %c0_11, %c0_12] : memref<1x1x128xf32, #tpu.memory_space<vmem>>, vector<1x1x128xf32>
    tpu.vector_store %arg5[%c0_10, %c0_11, %c0_12], %12 {strides = array<i32>} : memref<1x1x128xf32, #tpu.memory_space<vmem>>, vector<1x1x128xf32>,
    return
  }
  func.func @transform_0(%arg0: i32) -> (i32, i32) {
    %c0_i32 = arith.constant 0 : i32
    %c0_i32_0 = arith.constant 0 : i32
    return %arg0, %c0_i32 : i32, i32
  }
  func.func @transform_1(%arg0: i32) -> (i32, i32) {
    %c0_i32 = arith.constant 0 : i32
    %c0_i32_0 = arith.constant 0 : i32
    %c0_i32_1 = arith.constant 0 : i32
    return %c0_i32, %c0_i32_0 : i32, i32
  }
  func.func @transform_2(%arg0: i32) -> (i32, i32) {
    %c0_i32 = arith.constant 0 : i32
    %c0_i32_0 = arith.constant 0 : i32
    return %arg0, %c0_i32 : i32, i32
  }
  func.func @transform_3(%arg0: i32) -> (i32, i32, i32) {
    %c0_i32 = arith.constant 0 : i32
    %c0_i32_0 = arith.constant 0 : i32
    %c0_i32_1 = arith.constant 0 : i32
    return %arg0, %c0_i32, %c0_i32_0 : i32, i32, i32
  }
  func.func @transform_4(%arg0: i32) -> (i32, i32, i32) {
    %c0_i32 = arith.constant 0 : i32
    %c0_i32_0 = arith.constant 0 : i32
    %c0_i32_1 = arith.constant 0 : i32
    return %arg0, %c0_i32, %c0_i32_0 : i32, i32, i32
  }
}

module attributes {stable_mosaic.version = 11 : i64} {
  func.func @kernel(%arg0: i32, %arg1: memref<128x128xbf16, #tpu.memory_space<vmem>>, %arg2: memref<1x128xf32, #tpu.memory_space<vmem>>, %arg3: memref<1x128xf32, #tpu.memory_space<vmem>>, %arg4: memref<128x128xbf16, #tpu.memory_space<vmem>>) attributes {dimension_semantics = [#tpu.dimension_semantics<parallel>], iteration_bounds = array<i64: 1>, scalar_prefetch = 0 : i64, scratch_operands = 0 : i64, tpu.core_type = #tpu.core_type<tc>, window_params = [{transform_indices = @transform_0, window_bounds = array<i64: 128, 128>}, {pipeline_mode = #tpu.pipeline_mode<synchronous>, transform_indices = @transform_1, window_bounds = array<i64: 1, 128>}, {pipeline_mode = #tpu.pipeline_mode<synchronous>, transform_indices = @transform_2, window_bounds = array<i64: 1, 128>}, {transform_indices = @transform_3, window_bounds = array<i64: 128, 128>}]} {
    %c0 = arith.constant 0 : index
    %c0_0 = arith.constant 0 : index
    %0 = vector.load %arg1[%c0, %c0_0] : memref<128x128xbf16, #tpu.memory_space<vmem>>, vector<128x128xbf16>
    %1 = arith.extf %0 : vector<128x128xbf16> to vector<128x128xf32>
    %c0_1 = arith.constant 0 : index
    %c0_2 = arith.constant 0 : index
    %2 = vector.load %arg2[%c0_1, %c0_2] : memref<1x128xf32, #tpu.memory_space<vmem>>, vector<1x128xf32>
    %3 = vector.broadcast %2 : vector<1x128xf32> to vector<128x128xf32>
    %4 = arith.mulf %1, %3 : vector<128x128xf32>
    %c0_3 = arith.constant 0 : index
    %c0_4 = arith.constant 0 : index
    %5 = vector.load %arg3[%c0_3, %c0_4] : memref<1x128xf32, #tpu.memory_space<vmem>>, vector<1x128xf32>
    %6 = vector.broadcast %5 : vector<1x128xf32> to vector<128x128xf32>
    %7 = arith.addf %4, %6 : vector<128x128xf32>
    %cst = arith.constant 0.000000e+00 : f32
    %8 = vector.broadcast %cst : f32 to vector<128x128xf32>
    %9 = arith.maximumf %7, %8 : vector<128x128xf32>
    %10 = arith.truncf %9 : vector<128x128xf32> to vector<128x128xbf16>
    %c0_5 = arith.constant 0 : index
    %c0_6 = arith.constant 0 : index
    %11 = vector.load %arg4[%c0_5, %c0_6] : memref<128x128xbf16, #tpu.memory_space<vmem>>, vector<128x128xbf16>
    tpu.vector_store %arg4[%c0_5, %c0_6], %10 {strides = array<i32>} : memref<128x128xbf16, #tpu.memory_space<vmem>>, vector<128x128xbf16>,
    return
  }
  func.func @transform_0(%arg0: i32) -> (i32, i32) {
    %c0_i32 = arith.constant 0 : i32
    %c0_i32_0 = arith.constant 0 : i32
    return %arg0, %c0_i32 : i32, i32
  }
  func.func @transform_1(%arg0: i32) -> (i32, i32) {
    %c0_i32 = arith.constant 0 : i32
    %c0_i32_0 = arith.constant 0 : i32
    %c0_i32_1 = arith.constant 0 : i32
    return %c0_i32, %c0_i32_0 : i32, i32
  }
  func.func @transform_2(%arg0: i32) -> (i32, i32) {
    %c0_i32 = arith.constant 0 : i32
    %c0_i32_0 = arith.constant 0 : i32
    %c0_i32_1 = arith.constant 0 : i32
    return %c0_i32, %c0_i32_0 : i32, i32
  }
  func.func @transform_3(%arg0: i32) -> (i32, i32) {
    %c0_i32 = arith.constant 0 : i32
    %c0_i32_0 = arith.constant 0 : i32
    return %arg0, %c0_i32 : i32, i32
  }
}

module attributes {stable_mosaic.version = 11 : i64} {
  func.func @kernel(%arg0: i32, %arg1: memref<128x128xbf16, #tpu.memory_space<vmem>>, %arg2: memref<1x128xf32, #tpu.memory_space<vmem>>, %arg3: memref<1x128xf32, #tpu.memory_space<vmem>>, %arg4: memref<128x128xbf16, #tpu.memory_space<vmem>>, %arg5: memref<1x128xf32, #tpu.memory_space<vmem>>, %arg6: memref<1x128xf32, #tpu.memory_space<vmem>>, %arg7: memref<128x128xf32, #tpu.memory_space<vmem>>) attributes {dimension_semantics = [#tpu.dimension_semantics<parallel>], iteration_bounds = array<i64: 1>, scalar_prefetch = 0 : i64, scratch_operands = 0 : i64, tpu.core_type = #tpu.core_type<tc>, window_params = [{transform_indices = @transform_0, window_bounds = array<i64: 128, 128>}, {pipeline_mode = #tpu.pipeline_mode<synchronous>, transform_indices = @transform_1, window_bounds = array<i64: 1, 128>}, {pipeline_mode = #tpu.pipeline_mode<synchronous>, transform_indices = @transform_2, window_bounds = array<i64: 1, 128>}, {transform_indices = @transform_3, window_bounds = array<i64: 128, 128>}, {pipeline_mode = #tpu.pipeline_mode<synchronous>, transform_indices = @transform_4, window_bounds = array<i64: 1, 128>}, {pipeline_mode = #tpu.pipeline_mode<synchronous>, transform_indices = @transform_5, window_bounds = array<i64: 1, 128>}, {transform_indices = @transform_6, window_bounds = array<i64: 128, 128>}]} {
    %c0 = arith.constant 0 : index
    %c0_0 = arith.constant 0 : index
    %0 = vector.load %arg1[%c0, %c0_0] : memref<128x128xbf16, #tpu.memory_space<vmem>>, vector<128x128xbf16>
    %1 = arith.extf %0 : vector<128x128xbf16> to vector<128x128xf32>
    %c0_1 = arith.constant 0 : index
    %c0_2 = arith.constant 0 : index
    %2 = vector.load %arg2[%c0_1, %c0_2] : memref<1x128xf32, #tpu.memory_space<vmem>>, vector<1x128xf32>
    %3 = vector.broadcast %2 : vector<1x128xf32> to vector<128x128xf32>
    %4 = arith.mulf %1, %3 : vector<128x128xf32>
    %c0_3 = arith.constant 0 : index
    %c0_4 = arith.constant 0 : index
    %5 = vector.load %arg3[%c0_3, %c0_4] : memref<1x128xf32, #tpu.memory_space<vmem>>, vector<1x128xf32>
    %6 = vector.broadcast %5 : vector<1x128xf32> to vector<128x128xf32>
    %7 = arith.addf %4, %6 : vector<128x128xf32>
    %c0_5 = arith.constant 0 : index
    %c0_6 = arith.constant 0 : index
    %8 = vector.load %arg4[%c0_5, %c0_6] : memref<128x128xbf16, #tpu.memory_space<vmem>>, vector<128x128xbf16>
    %9 = arith.extf %8 : vector<128x128xbf16> to vector<128x128xf32>
    %c0_7 = arith.constant 0 : index
    %c0_8 = arith.constant 0 : index
    %10 = vector.load %arg5[%c0_7, %c0_8] : memref<1x128xf32, #tpu.memory_space<vmem>>, vector<1x128xf32>
    %11 = vector.broadcast %10 : vector<1x128xf32> to vector<128x128xf32>
    %12 = arith.mulf %9, %11 : vector<128x128xf32>
    %13 = arith.addf %7, %12 : vector<128x128xf32>
    %c0_9 = arith.constant 0 : index
    %c0_10 = arith.constant 0 : index
    %14 = vector.load %arg6[%c0_9, %c0_10] : memref<1x128xf32, #tpu.memory_space<vmem>>, vector<1x128xf32>
    %15 = vector.broadcast %14 : vector<1x128xf32> to vector<128x128xf32>
    %16 = arith.addf %13, %15 : vector<128x128xf32>
    %cst = arith.constant 0.000000e+00 : f32
    %17 = vector.broadcast %cst : f32 to vector<128x128xf32>
    %18 = arith.maximumf %16, %17 : vector<128x128xf32>
    %c0_11 = arith.constant 0 : index
    %c0_12 = arith.constant 0 : index
    %19 = vector.load %arg7[%c0_11, %c0_12] : memref<128x128xf32, #tpu.memory_space<vmem>>, vector<128x128xf32>
    tpu.vector_store %arg7[%c0_11, %c0_12], %18 {strides = array<i32>} : memref<128x128xf32, #tpu.memory_space<vmem>>, vector<128x128xf32>,
    return
  }
  func.func @transform_0(%arg0: i32) -> (i32, i32) {
    %c0_i32 = arith.constant 0 : i32
    %c0_i32_0 = arith.constant 0 : i32
    return %arg0, %c0_i32 : i32, i32
  }
  func.func @transform_1(%arg0: i32) -> (i32, i32) {
    %c0_i32 = arith.constant 0 : i32
    %c0_i32_0 = arith.constant 0 : i32
    %c0_i32_1 = arith.constant 0 : i32
    return %c0_i32, %c0_i32_0 : i32, i32
  }
  func.func @transform_2(%arg0: i32) -> (i32, i32) {
    %c0_i32 = arith.constant 0 : i32
    %c0_i32_0 = arith.constant 0 : i32
    %c0_i32_1 = arith.constant 0 : i32
    return %c0_i32, %c0_i32_0 : i32, i32
  }
  func.func @transform_3(%arg0: i32) -> (i32, i32) {
    %c0_i32 = arith.constant 0 : i32
    %c0_i32_0 = arith.constant 0 : i32
    return %arg0, %c0_i32 : i32, i32
  }
  func.func @transform_4(%arg0: i32) -> (i32, i32) {
    %c0_i32 = arith.constant 0 : i32
    %c0_i32_0 = arith.constant 0 : i32
    %c0_i32_1 = arith.constant 0 : i32
    return %c0_i32, %c0_i32_0 : i32, i32
  }
  func.func @transform_5(%arg0: i32) -> (i32, i32) {
    %c0_i32 = arith.constant 0 : i32
    %c0_i32_0 = arith.constant 0 : i32
    %c0_i32_1 = arith.constant 0 : i32
    return %c0_i32, %c0_i32_0 : i32, i32
  }
  func.func @transform_6(%arg0: i32) -> (i32, i32) {
    %c0_i32 = arith.constant 0 : i32
    %c0_i32_0 = arith.constant 0 : i32
    return %arg0, %c0_i32 : i32, i32
  }
}

</mosaic_0001>

<bundles_post_ra>
// kernel: basic_block_forward.6
= control target key start
LH: loop header
LB: loop body
LE: loop exit
PB: predicated region body
PF: predicated region fallthrough
CT: control target
= control target key end

     0   :  { %s422_s0 = inlined_call_operand.vmem [shape: bf16[128,128], index: 0, kind: input, shape index: {}]   ;;  %s423_s1 = inlined_call_operand.vmem [shape: f32[1,128], index: 1, kind: input, shape index: {}]   ;;  %s424_s2 = inlined_call_operand.vmem [shape: f32[1,128], index: 2, kind: input, shape index: {}]   ;;  %s425_s3 = inlined_call_operand.vmem [shape: bf16[128,128], index: 3, kind: output, shape index: {}]  }
   0x1   :  { %v227_v0 = vld [vmem:[%s422_s0] sm:$0xff]   ;;  %v298_v4 = vld [vmem:[%s422_s0 + $0x8] sm:$0xff]   ;;  %v299_v5 = vld [vmem:[%s422_s0 + $0x10] sm:$0xff]  }
   0x2   :  { %v338_v1 = vld [vmem:[%s423_s1] ss:$0 sm:$0xff]  ;;  %v228_v2 = vunpack.c.l.bf16 %v227_v0  ;;  %v229_v3 = vunpack.c.h.bf16 %v227_v0  ;;  %v300_v6 = vld [vmem:[%s422_s0 + $0x18] sm:$0xff]   ;;  %v232_v8 = vunpack.c.l.bf16 %v298_v4  ;;  %v233_v9 = vunpack.c.h.bf16 %v298_v4  ;;  %v302_v33 = vld [vmem:[%s422_s0 + $0x28] sm:$0xff]  }
   0x3   :  { %v352_v7 = vld [vmem:[%s424_s2] ss:$0 sm:$0xff]  ;;  %v236_v10 = vunpack.c.l.bf16 %v299_v5  ;;  %v237_v11 = vunpack.c.h.bf16 %v299_v5  ;;  %v240_v14 = vunpack.c.l.bf16 %v300_v6  ;;  %v241_v15 = vunpack.c.h.bf16 %v300_v6  ;;  %v303_v38 = vld [vmem:[%s422_s0 + $0x30] sm:$0xff]   ;;  %v304_v43 = vld [vmem:[%s422_s0 + $0x38] sm:$0xff]  }
   0x4   :  { %v53_v12 = vmul.f32 %v228_v2, %v338_v1  ;;  %v54_v13 = vmul.f32 %v229_v3, %v338_v1  ;;  %v55_v16 = vmul.f32 %v232_v8, %v338_v1  ;;  %v56_v17 = vmul.f32 %v233_v9, %v338_v1  ;;  %v301_v28 = vld [vmem:[%s422_s0 + $0x20] sm:$0xff]  }
   0x5   :  { %v57_v18 = vmul.f32 %v236_v10, %v338_v1  ;;  %v58_v19 = vmul.f32 %v237_v11, %v338_v1  ;;  %v59_v22 = vmul.f32 %v240_v14, %v338_v1  ;;  %v60_v23 = vmul.f32 %v241_v15, %v338_v1 }
   0x6   :  { %v76_v20 = vadd.f32 %v352_v7, %v53_v12  ;;  %v77_v21 = vadd.f32 %v352_v7, %v54_v13  ;;  %v78_v24 = vadd.f32 %v352_v7, %v55_v16  ;;  %v79_v25 = vadd.f32 %v352_v7, %v56_v17 }
   0x7   :  { %v80_v26 = vadd.f32 %v352_v7, %v57_v18  ;;  %v81_v27 = vadd.f32 %v352_v7, %v58_v19  ;;  %v82_v31 = vadd.f32 %v352_v7, %v59_v22  ;;  %v83_v32 = vadd.f32 %v352_v7, %v60_v23 }
   0x8   :  { %v92_v29 = vmax.f32 %v76_v20, 0.0  ;;  %v93_v30 = vmax.f32 %v77_v21, 0.0  ;;  %v94_v34 = vmax.f32 %v78_v24, 0.0  ;;  %v95_v35 = vmax.f32 %v79_v25, 0.0 }
   0x9   :  { %v96_v36 = vmax.f32 %v80_v26, 0.0  ;;  %v97_v37 = vmax.f32 %v81_v27, 0.0  ;;  %v98_v40 = vmax.f32 %v82_v31, 0.0  ;;  %v99_v41 = vmax.f32 %v83_v32, 0.0 }
   0xa   :  { %v261_v39 = vpack.c.bf16 %v93_v30, %v92_v29  ;;  %v244_v42 = vunpack.c.l.bf16 %v301_v28  ;;  %v266_v44 = vpack.c.bf16 %v95_v35, %v94_v34  ;;  %v245_v46 = vunpack.c.h.bf16 %v301_v28 }
   0xb   :  { %v271_v45 = vpack.c.bf16 %v97_v37, %v96_v36  ;;  %v248_v47 = vunpack.c.l.bf16 %v302_v33  ;;  %v276_v48 = vpack.c.bf16 %v99_v41, %v98_v40  ;;  %v249_v50 = vunpack.c.h.bf16 %v302_v33 }
   0xc   :  { %262 = vst [vmem:[%s425_s3] sm:$0xff] %v261_v39   ;;  %v61_v49 = vmul.f32 %v244_v42, %v338_v1  ;;  %v252_v51 = vunpack.c.l.bf16 %v303_v38  ;;  %305 = vst [vmem:[%s425_s3 + $0x8] sm:$0xff] %v266_v44   ;;  %v62_v52 = vmul.f32 %v245_v46, %v338_v1  ;;  %v253_v54 = vunpack.c.h.bf16 %v303_v38 }
   0xd   :  { %306 = vst [vmem:[%s425_s3 + $0x10] sm:$0xff] %v271_v45   ;;  %v63_v53 = vmul.f32 %v248_v47, %v338_v1  ;;  %v256_v55 = vunpack.c.l.bf16 %v304_v43  ;;  %307 = vst [vmem:[%s425_s3 + $0x18] sm:$0xff] %v276_v48   ;;  %v64_v57 = vmul.f32 %v249_v50, %v338_v1  ;;  %v257_v59 = vunpack.c.h.bf16 %v304_v43 }
   0xe   :  { %v84_v56 = vadd.f32 %v352_v7, %v61_v49  ;;  %v65_v58 = vmul.f32 %v252_v51, %v338_v1  ;;  %v85_v60 = vadd.f32 %v352_v7, %v62_v52  ;;  %v66_v62 = vmul.f32 %v253_v54, %v338_v1 }
   0xf   :  { %v86_v61 = vadd.f32 %v352_v7, %v63_v53  ;;  %v67_v63 = vmul.f32 %v256_v55, %v338_v1  ;;  %v87_v2 = vadd.f32 %v352_v7, %v64_v57  ;;  %v68_v4 = vmul.f32 %v257_v59, %v338_v1 }
  0x10   :  { %v100_v0 = vmax.f32 %v84_v56, 0.0  ;;  %v88_v3 = vadd.f32 %v352_v7, %v65_v58  ;;  %v101_v5 = vmax.f32 %v85_v60, 0.0  ;;  %v89_v8 = vadd.f32 %v352_v7, %v66_v62 }
  0x11   :  { %v102_v6 = vmax.f32 %v86_v61, 0.0  ;;  %v90_v9 = vadd.f32 %v352_v7, %v67_v63  ;;  %v103_v10 = vmax.f32 %v87_v2, 0.0  ;;  %v91_v12 = vadd.f32 %v352_v7, %v68_v4 }
  0x12   :  { %v104_v11 = vmax.f32 %v88_v3, 0.0  ;;  %v281_v13 = vpack.c.bf16 %v101_v5, %v100_v0  ;;  %v105_v14 = vmax.f32 %v89_v8, 0.0 }
  0x13   :  { %v106_v15 = vmax.f32 %v90_v9, 0.0  ;;  %v286_v16 = vpack.c.bf16 %v103_v10, %v102_v6  ;;  %v107_v17 = vmax.f32 %v91_v12, 0.0 }
  0x14   :  { %308 = vst [vmem:[%s425_s3 + $0x20] sm:$0xff] %v281_v13   ;;  %v291_v1 = vpack.c.bf16 %v105_v14, %v104_v11 }
  0x15   :  { %309 = vst [vmem:[%s425_s3 + $0x28] sm:$0xff] %v286_v16   ;;  %v296_v18 = vpack.c.bf16 %v107_v17, %v106_v15 }
  0x16   :  { %310 = vst [vmem:[%s425_s3 + $0x30] sm:$0xff] %v291_v1  }
  0x17   :  { %311 = vst [vmem:[%s425_s3 + $0x38] sm:$0xff] %v296_v18  }

// kernel: basic_block_forward.5
= control target key start
LH: loop header
LB: loop body
LE: loop exit
PB: predicated region body
PF: predicated region fallthrough
CT: control target
= control target key end

     0   :  { %s670_s1 = inlined_call_operand.vmem [shape: bf16[128,128], index: 1, kind: input, shape index: {}]   ;;  %s671_s0 = inlined_call_operand.vmem [shape: bf16[128,128], index: 0, kind: input, shape index: {}]   ;;  %s672_s2 = inlined_call_operand.vmem [shape: bf16[128,128], index: 2, kind: output, shape index: {0}]   ;;  %s673_s3 = inlined_call_operand.vmem [shape: f32[1,1,128], index: 3, kind: output, shape index: {1}]   ;;  %s674_s4 = inlined_call_operand.vmem [shape: f32[1,1,128], index: 4, kind: output, shape index: {2}]  }
   0x1   :  { %v551_v0 = vld [vmem:[%s670_s1] sm:$0xff]   ;;  %v552_v1 = vld [vmem:[%s670_s1 + $0x8] sm:$0xff]   ;;  %v553_v2 = vld [vmem:[%s670_s1 + $0x10] sm:$0xff]  }
   0x2   :  { %503 = vmatprep.subr.bf16.mxu0 %v551_v0  ;;  %535 = vmatprep.subr.bf16.mxu1 %v551_v0  ;;  %v554_v3 = vld [vmem:[%s670_s1 + $0x18] sm:$0xff]   ;;  %v559_v4 = vld [vmem:[%s671_s0] sm:$0xff]   ;;  %v556_v7 = vld [vmem:[%s670_s1 + $0x28] sm:$0xff]  }
   0x3   :  { %504 = vmatpush3.bf16.msra.mxu0 %v551_v0  ;;  %543 = vmatpush3.bf16.msra.mxu1 %v551_v0  ;;  %v555_v5 = vld [vmem:[%s670_s1 + $0x20] sm:$0xff]   ;;  %v557_v8 = vld [vmem:[%s670_s1 + $0x30] sm:$0xff]   ;;  %v558_v9 = vld [vmem:[%s670_s1 + $0x38] sm:$0xff]  }
   0x4   :  { %505 = vmatprep.subr.bf16.mxu0 %v552_v1  ;;  %536 = vmatprep.subr.bf16.mxu1 %v552_v1  ;;  %v563_v6 = vld [vmem:[%s671_s0 + $0x20] sm:$0xff]   ;;  %v560_v10 = vld [vmem:[%s671_s0 + $0x8] sm:$0xff]   ;;  %v561_v12 = vld [vmem:[%s671_s0 + $0x10] sm:$0xff]  }
   0x5   :  { %519 = vmatprep.mubr.bf16.mxu0 %v559_v4  ;;  %527 = vmatprep.mubr.bf16.mxu1 %v563_v6  ;;  %v564_v11 = vld [vmem:[%s671_s0 + $0x28] sm:$0xff]   ;;  %v565_v13 = vld [vmem:[%s671_s0 + $0x30] sm:$0xff]   ;;  %v562_v14 = vld [vmem:[%s671_s0 + $0x18] sm:$0xff]  }
   0x6   :  { %v566_v15 = vld [vmem:[%s671_s0 + $0x38] sm:$0xff]  }
   0x7   :  { %506 = vmatpush3.bf16.msra.mxu0 %v552_v1  ;;  %544 = vmatpush3.bf16.msra.mxu1 %v552_v1 }
   0x8   :  { %507 = vmatprep.subr.bf16.mxu0 %v553_v2  ;;  %537 = vmatprep.subr.bf16.mxu1 %v553_v2 }
   0xb   :  { %508 = vmatpush3.bf16.msra.mxu0 %v553_v2  ;;  %545 = vmatpush3.bf16.msra.mxu1 %v553_v2 }
   0xc   :  { %509 = vmatprep.subr.bf16.mxu0 %v554_v3  ;;  %538 = vmatprep.subr.bf16.mxu1 %v554_v3 }
   0xf   :  { %510 = vmatpush3.bf16.msra.mxu0 %v554_v3  ;;  %546 = vmatpush3.bf16.msra.mxu1 %v554_v3 }
  0x10   :  { %511 = vmatprep.subr.bf16.mxu0 %v555_v5  ;;  %539 = vmatprep.subr.bf16.mxu1 %v555_v5 }
  0x13   :  { %512 = vmatpush3.bf16.msra.mxu0 %v555_v5  ;;  %547 = vmatpush3.bf16.msra.mxu1 %v555_v5 }
  0x14   :  { %513 = vmatprep.subr.bf16.mxu0 %v556_v7  ;;  %540 = vmatprep.subr.bf16.mxu1 %v556_v7 }
  0x17   :  { %514 = vmatpush3.bf16.msra.mxu0 %v556_v7  ;;  %548 = vmatpush3.bf16.msra.mxu1 %v556_v7 }
  0x18   :  { %515 = vmatprep.subr.bf16.mxu0 %v557_v8  ;;  %541 = vmatprep.subr.bf16.mxu1 %v557_v8 }
  0x1b   :  { %516 = vmatpush3.bf16.msra.mxu0 %v557_v8  ;;  %549 = vmatpush3.bf16.msra.mxu1 %v557_v8 }
  0x1c   :  { %517 = vmatprep.subr.bf16.mxu0 %v558_v9  ;;  %542 = vmatprep.subr.bf16.mxu1 %v558_v9 }
  0x1f   :  { %518 = vmatpush3.bf16.msra.mxu0 %v558_v9  ;;  %550 = vmatpush3.bf16.msra.mxu1 %v558_v9 }
  0x22   :  { %520 = vmatmul.mubr.bf16.vlgmr.msra.gmra.mrb[0].mxu0 %v560_v10  ;;  %528 = vmatmul.mubr.bf16.vlgmr.msra.gmra.mrb[0].mxu1 %v564_v11 }
  0x23   :  { %523 = vmatprep.mubr.bf16.mxu0 %v561_v12  ;;  %531 = vmatprep.mubr.bf16.mxu1 %v565_v13 }
  0x2a   :  { %524 = vmatmul.mubr.bf16.gmra.mrb[4].mxu0 %v562_v14  ;;  %532 = vmatmul.mubr.bf16.gmra.mrb[4].mxu1 %v566_v15 }
  0xf5   :  { %v521_v16 = vpop.f32.mrb[0].mxu0  ;;  %v529_v17 = vpop.f32.mrb[0].mxu1 }
  0xf6   :  { %v177_v18 = vpop.f32.mrb[1].mxu0  ;;  %v209_v19 = vpop.f32.mrb[1].mxu1  ;;  %v344_v31 = vmul.f32 %v521_v16, %v521_v16  ;;  %v352_v3 = vmul.f32 %v529_v17, %v529_v17 }
  0xf7   :  { %v522_v20 = vpop.f32.mrb[2].mxu0  ;;  %v530_v21 = vpop.f32.mrb[2].mxu1  ;;  %v342_v22 = vmul.f32 %v177_v18, %v177_v18  ;;  %v350_v61 = vmul.f32 %v209_v19, %v209_v19 }
  0xf8   :  { %v448_v23 = vpack.c.bf16 %v522_v20, %v521_v16  ;;  %v180_v24 = vpop.f32.mrb[3].mxu0  ;;  %v468_v25 = vpack.c.bf16 %v530_v21, %v529_v17  ;;  %v212_v26 = vpop.f32.mrb[3].mxu1  ;;  %v345_v34 = vmul.f32 %v522_v20, %v522_v20  ;;  %v353_v6 = vmul.f32 %v530_v21, %v530_v21 }
  0xf9   :  { %v443_v27 = vpack.c.bf16 %v180_v24, %v177_v18  ;;  %v320_v28 = vadd.f32 %v180_v24, %v177_v18  ;;  %v343_v29 = vmul.f32 %v180_v24, %v180_v24  ;;  %v463_v30 = vpack.c.bf16 %v212_v26, %v209_v19 }
  0xfa   :  { %480 = vst [vmem:[%s672_s2 + $0x8] sm:$0xff] %v448_v23   ;;  %484 = vst [vmem:[%s672_s2 + $0x28] sm:$0xff] %v468_v25   ;;  %v351_v2 = vmul.f32 %v212_v26, %v212_v26 }
  0xfb   :  { %444 = vst [vmem:[%s672_s2] sm:$0xff] %v443_v27   ;;  %v321_v32 = vadd.f32 %v521_v16, %v320_v28  ;;  %v358_v33 = vadd.f32 %v343_v29, %v342_v22  ;;  %483 = vst [vmem:[%s672_s2 + $0x20] sm:$0xff] %v463_v30  }
  0xfd   :  { %v359_v35 = vadd.f32 %v358_v33, %v344_v31  ;;  %v525_v36 = vpop.f32.mrb[4].mxu0  ;;  %v322_v37 = vadd.f32 %v522_v20, %v321_v32  ;;  %v533_v38 = vpop.f32.mrb[4].mxu1 }
  0xfe   :  { %v193_v39 = vpop.f32.mrb[5].mxu0  ;;  %v225_v40 = vpop.f32.mrb[5].mxu1  ;;  %v348_v55 = vmul.f32 %v525_v36, %v525_v36  ;;  %v356_v15 = vmul.f32 %v533_v38, %v533_v38 }
  0xff   :  { %v323_v41 = vadd.f32 %v322_v37, %v193_v39  ;;  %v346_v42 = vmul.f32 %v193_v39, %v193_v39  ;;  %v360_v43 = vadd.f32 %v359_v35, %v345_v34  ;;  %v526_v44 = vpop.f32.mrb[6].mxu0  ;;  %v534_v45 = vpop.f32.mrb[6].mxu1  ;;  %v354_v9 = vmul.f32 %v225_v40, %v225_v40 }
 0x100   :  { %v458_v46 = vpack.c.bf16 %v526_v44, %v525_v36  ;;  %v196_v47 = vpop.f32.mrb[7].mxu0  ;;  %v478_v48 = vpack.c.bf16 %v534_v45, %v533_v38  ;;  %v228_v49 = vpop.f32.mrb[7].mxu1  ;;  %v349_v58 = vmul.f32 %v526_v44, %v526_v44 }
 0x101   :  { %v361_v50 = vadd.f32 %v360_v43, %v346_v42  ;;  %v453_v51 = vpack.c.bf16 %v196_v47, %v193_v39  ;;  %v324_v52 = vadd.f32 %v323_v41, %v196_v47  ;;  %v347_v53 = vmul.f32 %v196_v47, %v196_v47 }
 0x102   :  { %482 = vst [vmem:[%s672_s2 + $0x18] sm:$0xff] %v458_v46   ;;  %486 = vst [vmem:[%s672_s2 + $0x38] sm:$0xff] %v478_v48   ;;  %v473_v54 = vpack.c.bf16 %v228_v49, %v225_v40  ;;  %v355_v14 = vmul.f32 %v228_v49, %v228_v49 }
 0x103   :  { %481 = vst [vmem:[%s672_s2 + $0x10] sm:$0xff] %v453_v51   ;;  %v325_v56 = vadd.f32 %v525_v36, %v324_v52  ;;  %v362_v57 = vadd.f32 %v361_v50, %v347_v53 }
 0x104   :  { %485 = vst [vmem:[%s672_s2 + $0x30] sm:$0xff] %v473_v54  }
 0x105   :  { %v363_v59 = vadd.f32 %v362_v57, %v348_v55  ;;  %v326_v60 = vadd.f32 %v526_v44, %v325_v56 }
 0x107   :  { %v327_v62 = vadd.f32 %v326_v60, %v209_v19  ;;  %v364_v63 = vadd.f32 %v363_v59, %v349_v58  ;;  %v357_v19 = vmul.f32 %v534_v45, %v534_v45 }
 0x109   :  { %v365_v0 = vadd.f32 %v364_v63, %v350_v61  ;;  %v328_v1 = vadd.f32 %v327_v62, %v212_v26 }
 0x10b   :  { %v329_v4 = vadd.f32 %v529_v17, %v328_v1  ;;  %v366_v5 = vadd.f32 %v365_v0, %v351_v2 }
 0x10d   :  { %v367_v7 = vadd.f32 %v366_v5, %v352_v3  ;;  %v330_v8 = vadd.f32 %v530_v21, %v329_v4 }
 0x10f   :  { %v331_v10 = vadd.f32 %v330_v8, %v225_v40  ;;  %v368_v11 = vadd.f32 %v367_v7, %v353_v6 }
 0x111   :  { %v369_v12 = vadd.f32 %v368_v11, %v354_v9  ;;  %v332_v13 = vadd.f32 %v331_v10, %v228_v49 }
 0x113   :  { %v333_v16 = vadd.f32 %v533_v38, %v332_v13  ;;  %v370_v18 = vadd.f32 %v369_v12, %v355_v14 }
 0x115   :  { %v334_v20 = vadd.f32 %v534_v45, %v333_v16  ;;  %v371_v22 = vadd.f32 %v370_v18, %v356_v15 }
 0x117   :  { %v335_v23 = vrot.slane %v334_v20, 4  ;;  %v372_v24 = vadd.f32 %v371_v22, %v357_v19 }
 0x119   :  { %v336_v25 = vadd.f32 %v335_v23, %v334_v20  ;;  %v373_v17 = vrot.slane %v372_v24, 4 }
 0x11b   :  { %v337_v26 = vrot.slane %v336_v25, 2  ;;  %v374_v27 = vadd.f32 %v373_v17, %v372_v24 }
 0x11d   :  { %v338_v28 = vadd.f32 %v337_v26, %v336_v25  ;;  %v375_v21 = vrot.slane %v374_v27, 2 }
 0x11f   :  { %v339_v29 = vrot.slane %v338_v28, 1  ;;  %v376_v30 = vadd.f32 %v375_v21, %v374_v27 }
 0x121   :  { %v340_v31 = vadd.f32 %v339_v29, %v338_v28  ;;  %v377_v32 = vrot.slane %v376_v30, 1 }
 0x123   :  { %341 = vst [vmem:[%s673_s3] sm:$0x1] %v340_v31  ;;  %v378_v33 = vadd.f32 %v377_v32, %v376_v30 }
 0x125   :  { %379 = vst [vmem:[%s674_s4] sm:$0x1] %v378_v33 }

// kernel: basic_block_forward.9
= control target key start
LH: loop header
LB: loop body
LE: loop exit
PB: predicated region body
PF: predicated region fallthrough
CT: control target
= control target key end

     0   :  { %s528_s0 = inlined_call_operand.vmem [shape: bf16[128,128], index: 0, kind: input, shape index: {}]   ;;  %s529_s1 = inlined_call_operand.vmem [shape: f32[1,128], index: 1, kind: input, shape index: {}]   ;;  %s530_s2 = inlined_call_operand.vmem [shape: f32[1,128], index: 2, kind: input, shape index: {}]   ;;  %s531_s3 = inlined_call_operand.vmem [shape: bf16[128,128], index: 3, kind: input, shape index: {}]   ;;  %s532_s4 = inlined_call_operand.vmem [shape: f32[1,128], index: 4, kind: input, shape index: {}]   ;;  %s533_s5 = inlined_call_operand.vmem [shape: f32[1,128], index: 5, kind: input, shape index: {}]   ;;  %s534_s6 = inlined_call_operand.vmem [shape: f32[128,128], index: 6, kind: output, shape index: {}]  }
   0x1   :  { %v236_v0 = vld [vmem:[%s528_s0] sm:$0xff]   ;;  %v299_v9 = vld [vmem:[%s528_s0 + $0x8] sm:$0xff]   ;;  %v300_v15 = vld [vmem:[%s528_s0 + $0x10] sm:$0xff]  }
   0x2   :  { %v354_v1 = vld [vmem:[%s529_s1] ss:$0 sm:$0xff]  ;;  %v237_v2 = vunpack.c.l.bf16 %v236_v0  ;;  %v238_v5 = vunpack.c.h.bf16 %v236_v0  ;;  %v306_v10 = vld [vmem:[%s531_s3 + $0x8] sm:$0xff]   ;;  %v241_v13 = vunpack.c.l.bf16 %v299_v9  ;;  %v307_v16 = vld [vmem:[%s531_s3 + $0x10] sm:$0xff]   ;;  %v242_v19 = vunpack.c.h.bf16 %v299_v9 }
   0x3   :  { %v268_v3 = vld [vmem:[%s531_s3] sm:$0xff]   ;;  %v273_v14 = vunpack.c.l.bf16 %v306_v10  ;;  %v274_v20 = vunpack.c.h.bf16 %v306_v10  ;;  %v245_v28 = vunpack.c.l.bf16 %v300_v15  ;;  %v277_v29 = vunpack.c.l.bf16 %v307_v16  ;;  %v301_v34 = vld [vmem:[%s528_s0 + $0x18] sm:$0xff]   ;;  %v303_v9 = vld [vmem:[%s528_s0 + $0x28] sm:$0xff]  }
   0x4   :  { %v362_v4 = vld [vmem:[%s532_s4] ss:$0 sm:$0xff]  ;;  %v269_v7 = vunpack.c.l.bf16 %v268_v3  ;;  %v270_v8 = vunpack.c.h.bf16 %v268_v3  ;;  %v62_v11 = vmul.f32 %v237_v2, %v354_v1  ;;  %v63_v12 = vmul.f32 %v238_v5, %v354_v1  ;;  %v308_v43 = vld [vmem:[%s531_s3 + $0x18] sm:$0xff]  }
   0x5   :  { %v367_v6 = vld [vmem:[%s530_s2] ss:$0 sm:$0xff]  ;;  %v64_v23 = vmul.f32 %v241_v13, %v354_v1  ;;  %v142_v24 = vmul.f32 %v273_v14, %v362_v4  ;;  %v65_v26 = vmul.f32 %v242_v19, %v354_v1  ;;  %v143_v27 = vmul.f32 %v274_v20, %v362_v4  ;;  %v310_v14 = vld [vmem:[%s531_s3 + $0x28] sm:$0xff]  }
   0x6   :  { %v140_v17 = vmul.f32 %v269_v7, %v362_v4  ;;  %v141_v18 = vmul.f32 %v270_v8, %v362_v4  ;;  %v85_v21 = vadd.f32 %v367_v6, %v62_v11  ;;  %v86_v22 = vadd.f32 %v367_v6, %v63_v12  ;;  %v392_v25 = vld [vmem:[%s533_s5] ss:$0 sm:$0xff] }
   0x7   :  { %v87_v32 = vadd.f32 %v367_v6, %v64_v23  ;;  %v246_v33 = vunpack.c.h.bf16 %v300_v15  ;;  %v88_v35 = vadd.f32 %v367_v6, %v65_v26  ;;  %v66_v36 = vmul.f32 %v245_v28, %v354_v1  ;;  %v302_v56 = vld [vmem:[%s528_s0 + $0x20] sm:$0xff]   ;;  %v304_v28 = vld [vmem:[%s528_s0 + $0x30] sm:$0xff]  }
   0x8   :  { %v156_v30 = vadd.f32 %v140_v17, %v85_v21  ;;  %v157_v31 = vadd.f32 %v141_v18, %v86_v22  ;;  %v144_v37 = vmul.f32 %v277_v29, %v362_v4  ;;  %v278_v38 = vunpack.c.h.bf16 %v307_v16  ;;  %v309_v61 = vld [vmem:[%s531_s3 + $0x20] sm:$0xff]  }
   0x9   :  { %v158_v41 = vadd.f32 %v142_v24, %v87_v32  ;;  %v67_v42 = vmul.f32 %v246_v33, %v354_v1  ;;  %v159_v44 = vadd.f32 %v143_v27, %v88_v35  ;;  %v89_v45 = vadd.f32 %v367_v6, %v66_v36  ;;  %v311_v33 = vld [vmem:[%s531_s3 + $0x30] sm:$0xff]  }
   0xa   :  { %v179_v39 = vadd.f32 %v392_v25, %v156_v30  ;;  %v180_v40 = vadd.f32 %v392_v25, %v157_v31  ;;  %v145_v46 = vmul.f32 %v278_v38, %v362_v4  ;;  %v249_v47 = vunpack.c.l.bf16 %v301_v34 }
   0xb   :  { %v181_v50 = vadd.f32 %v392_v25, %v158_v41  ;;  %v90_v51 = vadd.f32 %v367_v6, %v67_v42  ;;  %v182_v52 = vadd.f32 %v392_v25, %v159_v44  ;;  %v160_v53 = vadd.f32 %v144_v37, %v89_v45 }
   0xc   :  { %v195_v48 = vmax.f32 %v179_v39, 0.0  ;;  %v196_v49 = vmax.f32 %v180_v40, 0.0  ;;  %v68_v54 = vmul.f32 %v249_v47, %v354_v1  ;;  %v281_v55 = vunpack.c.l.bf16 %v308_v43 }
   0xd   :  { %v197_v57 = vmax.f32 %v181_v50, 0.0  ;;  %v161_v58 = vadd.f32 %v145_v46, %v90_v51  ;;  %v250_v59 = vunpack.c.h.bf16 %v301_v34  ;;  %v282_v60 = vunpack.c.h.bf16 %v308_v43  ;;  %v305_v50 = vld [vmem:[%s528_s0 + $0x38] sm:$0xff]  }
   0xe   :  { %211 = vst [vmem:[%s534_s6] sm:$0xff] %v195_v48  ;;  %212 = vst [vmem:[%s534_s6 + $0x8] sm:$0xff] %v196_v49  ;;  %v198_v62 = vmax.f32 %v182_v52, 0.0  ;;  %v183_v63 = vadd.f32 %v392_v25, %v160_v53  ;;  %v91_v0 = vadd.f32 %v367_v6, %v68_v54  ;;  %v146_v2 = vmul.f32 %v281_v55, %v362_v4  ;;  %v312_v51 = vld [vmem:[%s531_s3 + $0x38] sm:$0xff]  }
   0xf   :  { %213 = vst [vmem:[%s534_s6 + $0x10] sm:$0xff] %v197_v57  ;;  %v184_v3 = vadd.f32 %v392_v25, %v161_v58  ;;  %v69_v5 = vmul.f32 %v250_v59, %v354_v1  ;;  %v147_v7 = vmul.f32 %v282_v60, %v362_v4  ;;  %v253_v8 = vunpack.c.l.bf16 %v302_v56 }
  0x10   :  { %214 = vst [vmem:[%s534_s6 + $0x18] sm:$0xff] %v198_v62  ;;  %v199_v10 = vmax.f32 %v183_v63, 0.0  ;;  %v162_v11 = vadd.f32 %v146_v2, %v91_v0  ;;  %v285_v12 = vunpack.c.l.bf16 %v309_v61  ;;  %v254_v13 = vunpack.c.h.bf16 %v302_v56 }
  0x11   :  { %v200_v15 = vmax.f32 %v184_v3, 0.0  ;;  %v92_v16 = vadd.f32 %v367_v6, %v69_v5  ;;  %v70_v17 = vmul.f32 %v253_v8, %v354_v1  ;;  %v286_v18 = vunpack.c.h.bf16 %v309_v61 }
  0x12   :  { %215 = vst [vmem:[%s534_s6 + $0x20] sm:$0xff] %v199_v10  ;;  %v185_v19 = vadd.f32 %v392_v25, %v162_v11  ;;  %v148_v20 = vmul.f32 %v285_v12, %v362_v4  ;;  %v71_v21 = vmul.f32 %v254_v13, %v354_v1  ;;  %v257_v22 = vunpack.c.l.bf16 %v303_v9 }
  0x13   :  { %216 = vst [vmem:[%s534_s6 + $0x28] sm:$0xff] %v200_v15  ;;  %v163_v23 = vadd.f32 %v147_v7, %v92_v16  ;;  %v93_v24 = vadd.f32 %v367_v6, %v70_v17  ;;  %v149_v26 = vmul.f32 %v286_v18, %v362_v4  ;;  %v289_v27 = vunpack.c.l.bf16 %v310_v14 }
  0x14   :  { %v201_v29 = vmax.f32 %v185_v19, 0.0  ;;  %v94_v30 = vadd.f32 %v367_v6, %v71_v21  ;;  %v72_v31 = vmul.f32 %v257_v22, %v354_v1  ;;  %v258_v32 = vunpack.c.h.bf16 %v303_v9 }
  0x15   :  { %v186_v34 = vadd.f32 %v392_v25, %v163_v23  ;;  %v164_v35 = vadd.f32 %v148_v20, %v93_v24  ;;  %v150_v36 = vmul.f32 %v289_v27, %v362_v4  ;;  %v290_v37 = vunpack.c.h.bf16 %v310_v14 }
  0x16   :  { %217 = vst [vmem:[%s534_s6 + $0x30] sm:$0xff] %v201_v29  ;;  %v165_v38 = vadd.f32 %v149_v26, %v94_v30  ;;  %v95_v39 = vadd.f32 %v367_v6, %v72_v31  ;;  %v73_v40 = vmul.f32 %v258_v32, %v354_v1  ;;  %v261_v41 = vunpack.c.l.bf16 %v304_v28 }
  0x17   :  { %v202_v42 = vmax.f32 %v186_v34, 0.0  ;;  %v187_v43 = vadd.f32 %v392_v25, %v164_v35  ;;  %v151_v44 = vmul.f32 %v290_v37, %v362_v4  ;;  %v293_v45 = vunpack.c.l.bf16 %v311_v33 }
  0x18   :  { %v188_v46 = vadd.f32 %v392_v25, %v165_v38  ;;  %v166_v47 = vadd.f32 %v150_v36, %v95_v39  ;;  %v96_v48 = vadd.f32 %v367_v6, %v73_v40  ;;  %v74_v49 = vmul.f32 %v261_v41, %v354_v1 }
  0x19   :  { %218 = vst [vmem:[%s534_s6 + $0x38] sm:$0xff] %v202_v42  ;;  %v203_v52 = vmax.f32 %v187_v43, 0.0  ;;  %v152_v53 = vmul.f32 %v293_v45, %v362_v4  ;;  %v262_v54 = vunpack.c.h.bf16 %v304_v28  ;;  %v294_v55 = vunpack.c.h.bf16 %v311_v33 }
  0x1a   :  { %v204_v56 = vmax.f32 %v188_v46, 0.0  ;;  %v189_v57 = vadd.f32 %v392_v25, %v166_v47  ;;  %v167_v58 = vadd.f32 %v151_v44, %v96_v48  ;;  %v97_v59 = vadd.f32 %v367_v6, %v74_v49 }
  0x1b   :  { %219 = vst [vmem:[%s534_s6 + $0x40] sm:$0xff] %v203_v52  ;;  %v75_v60 = vmul.f32 %v262_v54, %v354_v1  ;;  %v153_v61 = vmul.f32 %v294_v55, %v362_v4  ;;  %v265_v62 = vunpack.c.l.bf16 %v305_v50  ;;  %v297_v63 = vunpack.c.l.bf16 %v312_v51 }
  0x1c   :  { %220 = vst [vmem:[%s534_s6 + $0x48] sm:$0xff] %v204_v56  ;;  %v205_v0 = vmax.f32 %v189_v57, 0.0  ;;  %v190_v2 = vadd.f32 %v392_v25, %v167_v58  ;;  %v168_v3 = vadd.f32 %v152_v53, %v97_v59  ;;  %v266_v5 = vunpack.c.h.bf16 %v305_v50 }
  0x1d   :  { %v98_v7 = vadd.f32 %v367_v6, %v75_v60  ;;  %v76_v8 = vmul.f32 %v265_v62, %v354_v1  ;;  %v154_v9 = vmul.f32 %v297_v63, %v362_v4  ;;  %v298_v10 = vunpack.c.h.bf16 %v312_v51 }
  0x1e   :  { %221 = vst [vmem:[%s534_s6 + $0x50] sm:$0xff] %v205_v0  ;;  %v206_v11 = vmax.f32 %v190_v2, 0.0  ;;  %v191_v12 = vadd.f32 %v392_v25, %v168_v3  ;;  %v77_v13 = vmul.f32 %v266_v5, %v354_v1 }
  0x1f   :  { %v169_v14 = vadd.f32 %v153_v61, %v98_v7  ;;  %v99_v15 = vadd.f32 %v367_v6, %v76_v8  ;;  %v155_v16 = vmul.f32 %v298_v10, %v362_v4 }
  0x20   :  { %222 = vst [vmem:[%s534_s6 + $0x58] sm:$0xff] %v206_v11  ;;  %v207_v17 = vmax.f32 %v191_v12, 0.0  ;;  %v100_v18 = vadd.f32 %v367_v6, %v77_v13 }
  0x21   :  { %v192_v19 = vadd.f32 %v392_v25, %v169_v14  ;;  %v170_v20 = vadd.f32 %v154_v9, %v99_v15 }
  0x22   :  { %223 = vst [vmem:[%s534_s6 + $0x60] sm:$0xff] %v207_v17  ;;  %v171_v1 = vadd.f32 %v155_v16, %v100_v18 }
  0x23   :  { %v208_v21 = vmax.f32 %v192_v19, 0.0  ;;  %v193_v22 = vadd.f32 %v392_v25, %v170_v20 }
  0x24   :  { %v194_v4 = vadd.f32 %v392_v25, %v171_v1 }
  0x25   :  { %224 = vst [vmem:[%s534_s6 + $0x68] sm:$0xff] %v208_v21  ;;  %v209_v23 = vmax.f32 %v193_v22, 0.0 }
  0x26   :  { %v210_v24 = vmax.f32 %v194_v4, 0.0 }
  0x27   :  { %225 = vst [vmem:[%s534_s6 + $0x70] sm:$0xff] %v209_v23 }
  0x28   :  { %226 = vst [vmem:[%s534_s6 + $0x78] sm:$0xff] %v210_v24 }

</bundles_post_ra>
